<compile_context>
chip_gen: v5e
topology: v5e:2x2
jax: 0.10.0
libtpu: 0.0.40
codegen_flags: <defaults>
</compile_context>

<pallas_src>
import functools

import jax
import jax.numpy as jnp
from jax.experimental import pallas as pl
from jax.experimental.pallas import tpu as pltpu


_MASK_VALUE = -1e30  # large finite negative: avoids NaN when a row of a block is fully masked


def _head_kernel(x_q_ref, x_kv_ref, w_ref, o_ref, q_scr, m_scr, l_scr, acc_scr):
    """One (batch, q-block, k-block) grid step of causal single-head attention.

    x_q_ref : (1, block_q, C)   rows of x used for queries
    x_kv_ref: (1, block_k, C)   rows of x used for keys/values
    w_ref   : (C, 3H)           fused [W_q | W_k | W_v]
    o_ref   : (1, block_q, H)
    scratch : q_scr (block_q, H), m_scr/l_scr (block_q, 1), acc_scr (block_q, H)
    """
    H = o_ref.shape[-1]
    block_q = q_scr.shape[0]
    block_k = x_kv_ref.shape[1]
    C = x_q_ref.shape[-1]

    qi = pl.program_id(1)
    ki = pl.program_id(2)
    q_start = qi * block_q
    k_start = ki * block_k

    @pl.when(ki == 0)
    def _init():
        # Project queries once per q-block; fold the emb_dim**-0.5 scale into q
        # (T*H multiplies instead of T*T).
        x_q = x_q_ref[0]                       # native dtype into the MXU
        w_q = w_ref[...][:, :H]
        q = jnp.dot(x_q, w_q, preferred_element_type=jnp.float32)
        q_scr[...] = q * (C ** -0.5)
        m_scr[...] = jnp.full_like(m_scr, _MASK_VALUE)
        l_scr[...] = jnp.zeros_like(l_scr)
        acc_scr[...] = jnp.zeros_like(acc_scr)

    # Skip k-blocks that lie entirely above the causal diagonal.
    @pl.when(k_start <= q_start + block_q - 1)
    def _compute():
        # Fused k/v projection: one (block_k, C) x (C, 2H) matmul.
        x_kv = x_kv_ref[0]
        w_kv = w_ref[...][:, H:]
        kv = jnp.dot(x_kv, w_kv, preferred_element_type=jnp.float32)   # (block_k, 2H)
        k = kv[:, :H]
        v = kv[:, H:]

        # scores = q @ k^T, contracting over H without materializing k.T
        s = jax.lax.dot_general(
            q_scr[...], k,
            dimension_numbers=(((1,), (1,)), ((), ())),
            preferred_element_type=jnp.float32)                        # (block_q, block_k)

        # causal mask in global coordinates (only relevant on diagonal blocks,
        # but the VPU compare/select is cheap relative to exp)
        row = q_start + jax.lax.broadcasted_iota(jnp.int32, (block_q, block_k), 0)
        col = k_start + jax.lax.broadcasted_iota(jnp.int32, (block_q, block_k), 1)
        s = jnp.where(col <= row, s, _MASK_VALUE)

        # online softmax update
        m_prev = m_scr[...]
        m_new = jnp.maximum(m_prev, jnp.max(s, axis=-1, keepdims=True))
        alpha = jnp.exp(m_prev - m_new)
        p = jnp.exp(s - m_new)
        l_scr[...] = alpha * l_scr[...] + jnp.sum(p, axis=-1, keepdims=True)
        acc_scr[...] = alpha * acc_scr[...] + jnp.dot(
            p, v, preferred_element_type=jnp.float32)
        m_scr[...] = m_new

    @pl.when(ki == pl.num_programs(2) - 1)
    def _finalize():
        inv_l = pl.reciprocal(l_scr[...], approx=True)
        o_ref[0] = (acc_scr[...] * inv_l).astype(o_ref.dtype)


def _pick_block(T, target):
    """Largest multiple-of-8 divisor of T that is <= target (or T itself)."""
    if T <= target:
        return T
    b = (min(target, T) // 8) * 8
    while b >= 8:
        if T % b == 0:
            return b
        b -= 8
    return T


@functools.partial(jax.jit, static_argnames=("block_q", "block_k"))
def head_forward(x, w_key, w_query, w_value, *, block_q=256, block_k=256):
    """x: (B, T, C); w_*: (C, H). Returns (B, T, H)."""
    B, T, C = x.shape
    H = w_key.shape[1]

    bq = _pick_block(T, block_q)
    bk = _pick_block(T, block_k)
    n_q = T // bq
    n_k = T // bk

    # Fuse the three projection weights: [W_q | W_k | W_v] -> (C, 3H)
    w_fused = jnp.concatenate([w_query, w_key, w_value], axis=1)

    grid_spec = pltpu.PrefetchScalarGridSpec(
        num_scalar_prefetch=0,
        grid=(B, n_q, n_k),
        in_specs=[
            pl.BlockSpec((1, bq, C), lambda b, qi, ki: (b, qi, 0)),   # x rows for q
            pl.BlockSpec((1, bk, C), lambda b, qi, ki: (b, ki, 0)),   # x rows for k/v
            pl.BlockSpec((C, 3 * H), lambda b, qi, ki: (0, 0)),       # fused weights
        ],
        out_specs=pl.BlockSpec((1, bq, H), lambda b, qi, ki: (b, qi, 0)),
        scratch_shapes=[
            pltpu.VMEM((bq, H), jnp.float32),   # scaled q
            pltpu.VMEM((bq, 1), jnp.float32),   # running max
            pltpu.VMEM((bq, 1), jnp.float32),   # running denom
            pltpu.VMEM((bq, H), jnp.float32),   # accumulator
        ],
    )

    return pl.pallas_call(
        _head_kernel,
        out_shape=jax.ShapeDtypeStruct((B, T, H), x.dtype),
        grid_spec=grid_spec,
        compiler_params=pltpu.CompilerParams(
            dimension_semantics=("parallel", "parallel", "arbitrary"),
            vmem_limit_bytes=32 * 1024 * 1024,
        ),
    )(x, x, w_fused)


def _reference(x, w_key, w_query, w_value):
    """Pure-JAX reference matching the PyTorch forward."""
    B, T, C = x.shape
    k = x @ w_key
    q = x @ w_query
    v = x @ w_value
    wei = (q @ jnp.swapaxes(k, -2, -1)) * (C ** -0.5)
    tril = jnp.tril(jnp.ones((T, T)))
    wei = jnp.where(tril == 0, -jnp.inf, wei)
    wei = jax.nn.softmax(wei, axis=-1)
    return wei @ v


if __name__ == "__main__":
    # Small shapes consistent with the module: batch=2, seq=8, n_embd=32, head_size=16
    B, T, C, H = 2, 8, 32, 16

    key = jax.random.PRNGKey(0)
    kx, kk, kq, kv = jax.random.split(key, 4)

    x = jax.random.normal(kx, (B, T, C), dtype=jnp.float32)
    w_key = jax.random.normal(kk, (C, H), dtype=jnp.float32) * (C ** -0.5)
    w_query = jax.random.normal(kq, (C, H), dtype=jnp.float32) * (C ** -0.5)
    w_value = jax.random.normal(kv, (C, H), dtype=jnp.float32) * (C ** -0.5)

    out = jax.block_until_ready(head_forward(x, w_key, w_query, w_value))
    ref = _reference(x, w_key, w_query, w_value)
    assert out.shape == (B, T, H)
    assert jnp.allclose(out, ref, atol=2e-3, rtol=2e-3), "mismatch vs reference (small)"

    # Also exercise the tiled multi-block path (online softmax + causal block skipping).
    T2 = 128
    x2 = jax.random.normal(jax.random.PRNGKey(1), (B, T2, C), dtype=jnp.float32)
    out2 = jax.block_until_ready(
        head_forward(x2, w_key, w_query, w_value, block_q=64, block_k=64))
    ref2 = _reference(x2, w_key, w_query, w_value)
    assert out2.shape == (B, T2, H)
    assert jnp.allclose(out2, ref2, atol=2e-3, rtol=2e-3), "mismatch vs reference (tiled)"

    print("KERNEL_OK")
</pallas_src>

<mosaic_0001>
module attributes {stable_mosaic.version = 11 : i64} {
  func.func @_head_kernel(%arg0: i32, %arg1: i32, %arg2: i32, %arg3: memref<1x8x32xf32, #tpu.memory_space<vmem>>, %arg4: memref<1x8x32xf32, #tpu.memory_space<vmem>>, %arg5: memref<32x48xf32, #tpu.memory_space<vmem>>, %arg6: memref<1x8x16xf32, #tpu.memory_space<vmem>>, %arg7: memref<8x16xf32, #tpu.memory_space<vmem>>, %arg8: memref<8x1xf32, #tpu.memory_space<vmem>>, %arg9: memref<8x1xf32, #tpu.memory_space<vmem>>, %arg10: memref<8x16xf32, #tpu.memory_space<vmem>>) attributes {dimension_semantics = [#tpu.dimension_semantics<parallel>, #tpu.dimension_semantics<parallel>, #tpu.dimension_semantics<arbitrary>], iteration_bounds = array<i64: 2, 1, 1>, scalar_prefetch = 0 : i64, scratch_operands = 4 : i64, tpu.core_type = #tpu.core_type<tc>, window_params = [{transform_indices = @transform_0, window_bounds = array<i64: 1, 8, 32>}, {transform_indices = @transform_1, window_bounds = array<i64: 1, 8, 32>}, {pipeline_mode = #tpu.pipeline_mode<synchronous>, transform_indices = @transform_2, window_bounds = array<i64: 32, 48>}, {transform_indices = @transform_3, window_bounds = array<i64: 1, 8, 16>}]} {
    %c8_i32 = arith.constant 8 : i32
    %0 = arith.muli %arg1, %c8_i32 : i32
    %c8_i32_0 = arith.constant 8 : i32
    %1 = arith.muli %arg2, %c8_i32_0 : i32
    %c0_i32 = arith.constant 0 : i32
    %2 = arith.cmpi eq, %arg2, %c0_i32 : i32
    %3 = arith.extui %2 : i1 to i32
    %c0_i32_1 = arith.constant 0 : i32
    %4 = arith.cmpi ne, %3, %c0_i32_1 : i32
    scf.if %4 {
      %c0 = arith.constant 0 : index
      %c0_6 = arith.constant 0 : index
      %c0_7 = arith.constant 0 : index
      %13 = vector.load %arg3[%c0, %c0_6, %c0_7] : memref<1x8x32xf32, #tpu.memory_space<vmem>>, vector<1x8x32xf32>
      %14 = vector.shape_cast %13 : vector<1x8x32xf32> to vector<8x32xf32>
      %c0_8 = arith.constant 0 : index
      %c0_9 = arith.constant 0 : index
      %15 = vector.load %arg5[%c0_8, %c0_9] : memref<32x48xf32, #tpu.memory_space<vmem>>, vector<32x48xf32>
      %16 = vector.extract_strided_slice %15 {offsets = [0, 0], sizes = [32, 16], strides = [1, 1]} : vector<32x48xf32> to vector<32x16xf32>
      %cst = arith.constant dense<0.000000e+00> : vector<8x16xf32>
      %17 = tpu.matmul %14, %16, %cst {dimension_numbers = #tpu.dot_dimension_numbers<[1], [0], [0], [1], [0, 0, 1, 1], [], []>} : vector<8x32xf32>, vector<32x16xf32>, vector<8x16xf32> -> vector<8x16xf32>
      %cst_10 = arith.constant 0.176776692 : f32
      %18 = vector.broadcast %cst_10 : f32 to vector<8x16xf32>
      %19 = arith.mulf %17, %18 : vector<8x16xf32>
      %c0_11 = arith.constant 0 : index
      %c0_12 = arith.constant 0 : index
      %20 = vector.load %arg7[%c0_11, %c0_12] : memref<8x16xf32, #tpu.memory_space<vmem>>, vector<8x16xf32>
      tpu.vector_store %arg7[%c0_11, %c0_12], %19 {strides = array<i32>} : memref<8x16xf32, #tpu.memory_space<vmem>>, vector<8x16xf32>,
      %cst_13 = arith.constant -1.000000e+30 : f32
      %21 = vector.broadcast %cst_13 : f32 to vector<8x1xf32>
      %c0_14 = arith.constant 0 : index
      %c0_15 = arith.constant 0 : index
      %22 = vector.load %arg8[%c0_14, %c0_15] : memref<8x1xf32, #tpu.memory_space<vmem>>, vector<8x1xf32>
      tpu.vector_store %arg8[%c0_14, %c0_15], %21 {strides = array<i32>} : memref<8x1xf32, #tpu.memory_space<vmem>>, vector<8x1xf32>,
      %cst_16 = arith.constant 0.000000e+00 : f32
      %23 = vector.broadcast %cst_16 : f32 to vector<8x1xf32>
      %c0_17 = arith.constant 0 : index
      %c0_18 = arith.constant 0 : index
      %24 = vector.load %arg9[%c0_17, %c0_18] : memref<8x1xf32, #tpu.memory_space<vmem>>, vector<8x1xf32>
      tpu.vector_store %arg9[%c0_17, %c0_18], %23 {strides = array<i32>} : memref<8x1xf32, #tpu.memory_space<vmem>>, vector<8x1xf32>,
      %cst_19 = arith.constant 0.000000e+00 : f32
      %25 = vector.broadcast %cst_19 : f32 to vector<8x16xf32>
      %c0_20 = arith.constant 0 : index
      %c0_21 = arith.constant 0 : index
      %26 = vector.load %arg10[%c0_20, %c0_21] : memref<8x16xf32, #tpu.memory_space<vmem>>, vector<8x16xf32>
      tpu.vector_store %arg10[%c0_20, %c0_21], %25 {strides = array<i32>} : memref<8x16xf32, #tpu.memory_space<vmem>>, vector<8x16xf32>,
    } else {
    }
    %c8_i32_2 = arith.constant 8 : i32
    %5 = arith.addi %0, %c8_i32_2 : i32
    %c1_i32 = arith.constant 1 : i32
    %6 = arith.subi %5, %c1_i32 : i32
    %7 = arith.cmpi sle, %1, %6 : i32
    %8 = arith.extui %7 : i1 to i32
    %c0_i32_3 = arith.constant 0 : i32
    %9 = arith.cmpi ne, %8, %c0_i32_3 : i32
    scf.if %9 {
      %c0 = arith.constant 0 : index
      %c0_6 = arith.constant 0 : index
      %c0_7 = arith.constant 0 : index
      %13 = vector.load %arg4[%c0, %c0_6, %c0_7] : memref<1x8x32xf32, #tpu.memory_space<vmem>>, vector<1x8x32xf32>
      %14 = vector.shape_cast %13 : vector<1x8x32xf32> to vector<8x32xf32>
      %c0_8 = arith.constant 0 : index
      %c0_9 = arith.constant 0 : index
      %15 = vector.load %arg5[%c0_8, %c0_9] : memref<32x48xf32, #tpu.memory_space<vmem>>, vector<32x48xf32>
      %16 = vector.extract_strided_slice %15 {offsets = [0, 16], sizes = [32, 32], strides = [1, 1]} : vector<32x48xf32> to vector<32x32xf32>
      %cst = arith.constant dense<0.000000e+00> : vector<8x32xf32>
      %17 = tpu.matmul %14, %16, %cst {dimension_numbers = #tpu.dot_dimension_numbers<[1], [0], [0], [1], [0, 0, 1, 1], [], []>} : vector<8x32xf32>, vector<32x32xf32>, vector<8x32xf32> -> vector<8x32xf32>
      %18 = vector.extract_strided_slice %17 {offsets = [0, 0], sizes = [8, 16], strides = [1, 1]} : vector<8x32xf32> to vector<8x16xf32>
      %19 = vector.extract_strided_slice %17 {offsets = [0, 16], sizes = [8, 16], strides = [1, 1]} : vector<8x32xf32> to vector<8x16xf32>
      %c0_10 = arith.constant 0 : index
      %c0_11 = arith.constant 0 : index
      %20 = vector.load %arg7[%c0_10, %c0_11] : memref<8x16xf32, #tpu.memory_space<vmem>>, vector<8x16xf32>
      %cst_12 = arith.constant dense<0.000000e+00> : vector<8x8xf32>
      %21 = tpu.matmul %20, %18, %cst_12 {dimension_numbers = #tpu.dot_dimension_numbers<[1], [1], [0], [0], [0, 0, 1, 0], [], []>} : vector<8x16xf32>, vector<8x16xf32>, vector<8x8xf32> -> vector<8x8xf32>
      %22 = tpu.iota {dimensions = array<i32: 0>} : vector<8x8xi32>
      %23 = vector.broadcast %0 : i32 to vector<8x8xi32>
      %24 = arith.addi %23, %22 : vector<8x8xi32>
      %25 = tpu.iota {dimensions = array<i32: 1>} : vector<8x8xi32>
      %26 = vector.broadcast %1 : i32 to vector<8x8xi32>
      %27 = arith.addi %26, %25 : vector<8x8xi32>
      %28 = arith.cmpi sle, %27, %24 : vector<8x8xi32>
      %cst_13 = arith.constant -1.000000e+30 : f32
      %29 = vector.broadcast %cst_13 : f32 to vector<8x8xf32>
      %30 = arith.select %28, %21, %29 : vector<8x8xi1>, vector<8x8xf32>
      %c0_14 = arith.constant 0 : index
      %c0_15 = arith.constant 0 : index
      %31 = vector.load %arg8[%c0_14, %c0_15] : memref<8x1xf32, #tpu.memory_space<vmem>>, vector<8x1xf32>
      %cst_16 = arith.constant dense<0xFF800000> : vector<8xf32>
      %32 = vector.multi_reduction <maximumf>, %30, %cst_16 [1] : vector<8x8xf32> to vector<8xf32>
      %33 = vector.shape_cast %32 : vector<8xf32> to vector<8x1xf32>
      %34 = arith.maximumf %31, %33 : vector<8x1xf32>
      %35 = arith.subf %31, %34 : vector<8x1xf32>
      %36 = math.exp %35 : vector<8x1xf32>
      %37 = vector.broadcast %34 : vector<8x1xf32> to vector<8x8xf32>
      %38 = arith.subf %30, %37 : vector<8x8xf32>
      %39 = math.exp %38 : vector<8x8xf32>
      %c0_17 = arith.constant 0 : index
      %c0_18 = arith.constant 0 : index
      %40 = vector.load %arg9[%c0_17, %c0_18] : memref<8x1xf32, #tpu.memory_space<vmem>>, vector<8x1xf32>
      %41 = arith.mulf %36, %40 : vector<8x1xf32>
      %cst_19 = arith.constant dense<0.000000e+00> : vector<8xf32>
      %42 = vector.multi_reduction <add>, %39, %cst_19 [1] : vector<8x8xf32> to vector<8xf32>
      %43 = vector.shape_cast %42 : vector<8xf32> to vector<8x1xf32>
      %44 = arith.addf %41, %43 : vector<8x1xf32>
      %c0_20 = arith.constant 0 : index
      %c0_21 = arith.constant 0 : index
      %45 = vector.load %arg9[%c0_20, %c0_21] : memref<8x1xf32, #tpu.memory_space<vmem>>, vector<8x1xf32>
      tpu.vector_store %arg9[%c0_20, %c0_21], %44 {strides = array<i32>} : memref<8x1xf32, #tpu.memory_space<vmem>>, vector<8x1xf32>,
      %c0_22 = arith.constant 0 : index
      %c0_23 = arith.constant 0 : index
      %46 = vector.load %arg10[%c0_22, %c0_23] : memref<8x16xf32, #tpu.memory_space<vmem>>, vector<8x16xf32>
      %47 = vector.broadcast %36 : vector<8x1xf32> to vector<8x16xf32>
      %48 = arith.mulf %47, %46 : vector<8x16xf32>
      %cst_24 = arith.constant dense<0.000000e+00> : vector<8x16xf32>
      %49 = tpu.matmul %39, %19, %cst_24 {dimension_numbers = #tpu.dot_dimension_numbers<[1], [0], [0], [1], [0, 0, 1, 1], [], []>} : vector<8x8xf32>, vector<8x16xf32>, vector<8x16xf32> -> vector<8x16xf32>
      %50 = arith.addf %48, %49 : vector<8x16xf32>
      %c0_25 = arith.constant 0 : index
      %c0_26 = arith.constant 0 : index
      %51 = vector.load %arg10[%c0_25, %c0_26] : memref<8x16xf32, #tpu.memory_space<vmem>>, vector<8x16xf32>
      tpu.vector_store %arg10[%c0_25, %c0_26], %50 {strides = array<i32>} : memref<8x16xf32, #tpu.memory_space<vmem>>, vector<8x16xf32>,
      %c0_27 = arith.constant 0 : index
      %c0_28 = arith.constant 0 : index
      %52 = vector.load %arg8[%c0_27, %c0_28] : memref<8x1xf32, #tpu.memory_space<vmem>>, vector<8x1xf32>
      tpu.vector_store %arg8[%c0_27, %c0_28], %34 {strides = array<i32>} : memref<8x1xf32, #tpu.memory_space<vmem>>, vector<8x1xf32>,
    } else {
    }
    %c0_i32_4 = arith.constant 0 : i32
    %10 = arith.cmpi eq, %arg2, %c0_i32_4 : i32
    %11 = arith.extui %10 : i1 to i32
    %c0_i32_5 = arith.constant 0 : i32
    %12 = arith.cmpi ne, %11, %c0_i32_5 : i32
    scf.if %12 {
      %c0 = arith.constant 0 : index
      %c0_6 = arith.constant 0 : index
      %13 = vector.load %arg9[%c0, %c0_6] : memref<8x1xf32, #tpu.memory_space<vmem>>, vector<8x1xf32>
      %14 = tpu.reciprocal %13 {approx = true} : vector<8x1xf32> -> vector<8x1xf32>
      %c0_7 = arith.constant 0 : index
      %c0_8 = arith.constant 0 : index
      %15 = vector.load %arg10[%c0_7, %c0_8] : memref<8x16xf32, #tpu.memory_space<vmem>>, vector<8x16xf32>
      %16 = vector.broadcast %14 : vector<8x1xf32> to vector<8x16xf32>
      %17 = arith.mulf %15, %16 : vector<8x16xf32>
      %c0_9 = arith.constant 0 : index
      %c0_10 = arith.constant 0 : index
      %c0_11 = arith.constant 0 : index
      %18 = vector.load %arg6[%c0_9, %c0_10, %c0_11] : memref<1x8x16xf32, #tpu.memory_space<vmem>>, vector<1x8x16xf32>
      %19 = vector.shape_cast %18 : vector<1x8x16xf32> to vector<8x16xf32>
      %20 = vector.shape_cast %17 : vector<8x16xf32> to vector<1x8x16xf32>
      tpu.vector_store %arg6[%c0_9, %c0_10, %c0_11], %20 {strides = array<i32>} : memref<1x8x16xf32, #tpu.memory_space<vmem>>, vector<1x8x16xf32>,
    } else {
    }
    return
  }
  func.func @transform_0(%arg0: i32, %arg1: i32, %arg2: i32) -> (i32, i32, i32) {
    %c0_i32 = arith.constant 0 : i32
    %c0_i32_0 = arith.constant 0 : i32
    return %arg0, %arg1, %c0_i32 : i32, i32, i32
  }
  func.func @transform_1(%arg0: i32, %arg1: i32, %arg2: i32) -> (i32, i32, i32) {
    %c0_i32 = arith.constant 0 : i32
    %c0_i32_0 = arith.constant 0 : i32
    return %arg0, %arg2, %c0_i32 : i32, i32, i32
  }
  func.func @transform_2(%arg0: i32, %arg1: i32, %arg2: i32) -> (i32, i32) {
    %c0_i32 = arith.constant 0 : i32
    %c0_i32_0 = arith.constant 0 : i32
    %c0_i32_1 = arith.constant 0 : i32
    return %c0_i32, %c0_i32_0 : i32, i32
  }
  func.func @transform_3(%arg0: i32, %arg1: i32, %arg2: i32) -> (i32, i32, i32) {
    %c0_i32 = arith.constant 0 : i32
    %c0_i32_0 = arith.constant 0 : i32
    return %arg0, %arg1, %c0_i32 : i32, i32, i32
  }
}

</mosaic_0001>

<bundles_post_ra>
// kernel: head_forward.1
= control target key start
LH: loop header
LB: loop body
LE: loop exit
PB: predicated region body
PF: predicated region fallthrough
CT: control target
= control target key end

     0   :  { %8 = vsyncpa [#allocation7], 0  ;;  %s863_s0 = inlined_call_operand.vmem [shape: f32[2,8,32], index: 0, kind: input, shape index: {}, may-alias: {0,1}]   ;;  %s864_s1 = inlined_call_operand.vmem [shape: f32[2,8,32], index: 1, kind: input, shape index: {}, may-alias: {0,1}]   ;;  %s865_s2 = inlined_call_operand.vmem [shape: f32[32,48], index: 2, kind: input, shape index: {}]   ;;  %s866_s3 = inlined_call_operand.hbm [shape: f32[2,8,16], index: 3, kind: output, shape index: {}]  }
   0x1   :  { %10 = vsyncpa [#allocation7 + $0x1], 0  ;;  %s735_s12 = smov 0   ;;  %s737_s13 = smov 0  }
   0x2   :  { %s739_s14 = smov 0   ;;  %s741_s15 = smov 0  }
   0x3   :  { %s743_s16 = smov 0   ;;  %s745_s17 = smov 0  }
   0x4 LB: > { %s537_s18 = sadd.s32 4294967295, %s709_s17   ;;  %s538_s19 = sadd.s32 4294967294, %s709_s17   ;;  %s709_s17 = sphi %s745_s17, %s16_s17   ;;  %s705_s16 = sphi %s743_s16, %s873_s16   ;;  %s701_s15 = sphi %s741_s15, %s872_s15   ;;  %s697_s14 = sphi %s739_s14, %s871_s14   ;;  %s693_s13 = sphi %s737_s13, %s870_s13   ;;  %s689_s12 = sphi %s735_s12, %s869_s12  }
   0x5   : > { %s35_s20 = sadd.s32 1, %s705_s16  ;;  %s121_s21 = sadd.s32 1, %s697_s14 }
   0x6   : > { %p37_p0 = scmp.ge.s32.totalorder %s35_s20, 2  ;;  %p131_p1 = scmp.ne.s32.totalorder %s697_s14, %s693_s13 }
   0x7   : > { %p132_p2 = scmp.eq.s32.totalorder %s537_s18, 1  ;;  %p137_p3 = scmp.ne.s32.totalorder %s693_s13, %s689_s12 }
   0x8   : > { %s875_s20 = smov (%p37_p0, %s35_s20), 0  ;;  %p138_p5 = scmp.eq.s32.totalorder %s538_s19, 1 }
   0x9   : > { %p775_p4 = por %p132_p2, %p131_p1  ;;  %s116_s23 = ssub.s32 %s705_s16, %s875_s20 }
   0xa   : > { %p541_p6 = scmp.ge.s32.totalorder %s709_s17, 1  ;;  %p119_p7 = scmp.eq.s32.totalorder %s116_s23, 0 }
   0xb   : > { %p782_p8 = por %p138_p5, %p137_p3  ;;  %p179_p9 = scmp.lt.s32.totalorder %s709_s17, 3 }
   0xc   : > { %s788_s25 = scalar_select %p119_p7, %s697_s14, %s121_s21  }
   0xd   : > { %p180_p10 = pnand %p541_p6, %p179_p9 }
   0xe   : > { %s711_s30 = smov (!%p180_p10), 112   ;;  %p212_p11 = scmp.lt.s32.totalorder (!%p180_p10), %s701_s15, 1 }
   0xf   : > { %183 = sbr.rel (%p180_p10) target bundleno = 912 (0x390), region = 32  ;;  %s209_s26 = sand.u32 (!%p180_p10), 1, %s693_s13  }
  0x10   : > { %s542_s27 = sshll.u32 (!%p180_p10), %s209_s26, 3  ;;  %s551_s28 = sshll.u32 (!%p180_p10), %s701_s15, 3 }
  0x11   : > { %s443_s4 = scalar_lea.hbm (!%p180_p10), %s866_s3, %s551_s28  ;;  %s211_s5 = scalar_lea.vmem (!%p180_p10), [#allocation6], %s542_s27 }
  0x12   : > { %s445_s6 = sshll.u32 (!%p180_p10), %s211_s5, 4  ;;  %s447_s7 = sshll.u32 (!%p180_p10), %s443_s4, 4  ;;  %s446_s6 = int_to_ptr.vmem [resolvable:$true] %s445_s6  ;;  %s448_s7 = int_to_ptr.hbm [resolvable:$true] %s447_s7 }
  0x14   : > { %v276_v0 = vld [vmem:[%s865_s2 + $0x10] sm:$0xff]  ;;  %v277_v1 = vld [vmem:[%s865_s2 + $0x18] sm:$0xff]  ;;  %v274_v3 = vld [vmem:[%s865_s2] sm:$0xff]  ;;  %s213_s8 = scalar_select %p212_p11, %s701_s15, 1  ;;  %vm237_vm0 = vcmask 261120   ;;  %vm262_vm1 = vcmask 130048   ;;  %v346_v21 = vlaneseq }
  0x15   : > { %v613_v2 = vpack.i.bf16 %v276_v0, %v277_v1  ;;  %253 = vmatpush.msra.mxu0 %v277_v1  ;;  %v275_v4 = vld [vmem:[%s865_s2 + $0x8] sm:$0xff]  ;;  %v712_v14 = vmov 0.0   ;;  %vm264_vm2 = vcmask 7168   ;;  %v713_v20 = vmov -1e+30  }
  0x16   : > { %v618_v5 = vpack.i.bf16 %v274_v3, %v275_v4  ;;  %s543_s9 = sshll.u32 %s213_s8, 3  ;;  %267 = vst.msk [vmem:[#allocation5] sm:$0xff] %vm262_vm1, %v712_v14  ;;  %v347_v22 = vshrl.u32 %v346_v21, 7  ;;  %v351_v23 = vand.u32 127, %v346_v21  ;;  %vm357_vm4 = vcmask 64512   ;;  %s432_s8 = scalar_lea.sflag [#allocation7], %s209_s26 }
  0x17   : > { %614 = vrot.lane.b32.xlu0 %v613_v2, %s711_s30  ;;  %254 = vmatpush.msra.mxu0 %v276_v0  ;;  %s218_s18 = scalar_lea.vmem %s863_s0, %s543_s9  ;;  %s225_s23 = scalar_lea.vmem %s864_s1, %s543_s9  ;;  %265 = vst.msk [vmem:[#allocation3] sm:$0xff] %vm264_vm2, %v713_v20  ;;  %v714_v27 = vmov 0  }
  0x18   : > { %v232_v6 = vld [vmem:[%s218_s18] sm:$0xff]  ;;  %266 = vst.msk [vmem:[#allocation4] sm:$0xff] %vm264_vm2, %v712_v14  ;;  %vm354_vm3 = vcmp.le.s32.totalorder %v351_v23, %v347_v22  ;;  %623 = vset.pattern.permute.xlu1 %v714_v27  ;;  %624 = vset.pattern.permute.xlu0 %v714_v27  ;;  %s645_s9 = sshra.s32 %s448_s7, 4  ;;  %s651_s18 = scalar_lea.hbm %s866_s3, 16  ;;  %s646_s9 = int_to_ptr.hbm [resolvable:$true] %s645_s9 }
  0x19   : > { %255 = vmatpush.msra.mxu0 %v275_v4  ;;  %v273_v13 = vld [vmem:[%s225_s23] sm:$0xff]  ;;  %s647_s10 = scalar_lea.hbm %s646_s9, 8  ;;  %p652_p1 = scmp.lt.s32.totalorder %s646_s9, %s866_s3 }
  0x1a   : > { %p648_p12 = scmp.ne.s32.totalorder %s646_s9, %s647_s10  ;;  %p653_p2 = scmp.lt.s32.totalorder %s651_s18, %s647_s10 }
  0x1b   : > { %256 = vmatpush.msra.mxu0 %v274_v3 }
  0x1c   : > { %545 = vmatmul.msk.f32.vlgmr.msra.gmra.mxu0 %vm237_vm0, %v232_v6  ;;  %p649_p13 = pnand %p648_p12, %p775_p4  ;;  %p654_p3 = por %p653_p2, %p652_p1 }
  0x1d   : > { %v381_v44 = vld [vmem:[#allocation5] sm:$0xff] }
  0x1e   : > { %v356_v28 = vld [vmem:[#allocation3] sm:$0xff]  ;;  %p650_p0 = pneg %p649_p13 }
  0x1f   : > { %619 = vrot.lane.b32.xlu0 %v618_v5, %s711_s30  ;;  %v373_v39 = vld [vmem:[#allocation4] sm:$0xff] }
  0x20   : > { %p655_p5 = pnand %p654_p3, %p650_p0 }
  0x89   : > { %v615_v7 = vpop.permute.xlu0 %614 }
  0x8a   : > { %v616_v8 = vunpack.i.l.bf16 %v615_v7  ;;  %v617_v9 = vunpack.i.h.bf16 %v615_v7 }
  0x8c   : > { %310 = vmatpush.msra.mxu1 %v616_v8 }
  0x8e   : > { %311 = vmatpush.msra.mxu1 %v617_v9 }
  0x91   : > { %v620_v10 = vpop.permute.xlu0 %619 }
  0x92   : > { %v621_v11 = vunpack.i.l.bf16 %v620_v10  ;;  %v622_v12 = vunpack.i.h.bf16 %v620_v10 }
  0x94   : > { %312 = vmatpush.msra.mxu1 %v621_v11 }
  0x96   : > { %313 = vmatpush.msra.mxu1 %v622_v12 }
  0x97   : > { %546 = vmatmul.msk.f32.vlgmr.msra.gmra.mxu1 %vm237_vm0, %v273_v13 }
  0x99   : > { %v258_v15 = vpop.f32.mrf.mxu0 }
  0x9a   : > { %v261_v16 = vmul.f32 0.17677669, %v258_v15 }
  0x9c   : > { %263 = vst.msk [vmem:[#allocation2] sm:$0xff] %vm262_vm1, %v261_v16 }
  0xa3   : > { %v318_v18 = vld [vmem:[#allocation2] sm:$0xff] }
 0x114   : > { %v315_v17 = vpop.f32.mrf.mxu1 }
 0x115   : > { %388 = vrot.lane.b32.xlu2 %v315_v17, %s711_s30  ;;  %547 = vmatpush.xpose.msk.msra.mxu2 %vm262_vm1, %v315_v17 }
 0x118   : > { %548 = vmatmul.msk.f32.vlgmr.msra.gmra.mxu2 %vm262_vm1, %v318_v18 }
 0x16f   : > { %v389_v19 = vpop.permute.xlu2 %388 }
 0x170   : > { %409 = vmatpush.msra.mxu3 %v389_v19 }
 0x19b   : > { %v343_v24 = vpop.f32.mrf.mxu2 }
 0x19c   : > { %v355_v25 = vsel %vm354_vm3, %v343_v24, -1e+30 }
 0x19d   : > { %v358_v26 = vsel %vm357_vm4, %v355_v25, -inf }
 0x19e   : > { %359 = vmax.xlane.f32.xlu1 %v358_v26 }
 0x211   : > { %v360_v29 = vpop.xlane.xlu1 %359 }
 0x212   : > { %v361_v30 = vmax.f32 %v356_v28, %v360_v29 }
 0x214   : > { %v362_v31 = vsub.f32 %v356_v28, %v361_v30  ;;  %416 = vst.msk [vmem:[#allocation3] sm:$0xff] %vm264_vm2, %v361_v30  ;;  %367 = vperm.xlu1 %623, %v361_v30  }
 0x216   : > { %v363_v32 = vmul.f32 1.442695, %v362_v31 }
 0x218   : > { %625 = vpow2.f32 %v363_v32 }
 0x21e   : > { %v626_v33 = vpop.eup %625 }
 0x21f   : > { %384 = vperm.xlu0 %624, %v626_v33   ;;  %v374_v40 = vmul.f32 %v626_v33, %v373_v39 }
 0x286   : > { %v368_v34 = vpop.permute.xlu1 %367 }
 0x287   : > { %v370_v35 = vsub.f32 %v355_v25, %v368_v34 }
 0x289   : > { %v371_v36 = vmul.f32 1.442695, %v370_v35 }
 0x28b   : > { %627 = vpow2.f32 %v371_v36 }
 0x291   : > { %v628_v37 = vpop.eup %627  ;;  %v385_v45 = vpop.permute.xlu0 %384 }
 0x292   : > { %549 = vmatmul.msk.f32.vlgmr.msra.gmra.mxu3 %vm357_vm4, %v628_v37  ;;  %v375_v38 = vsel %vm357_vm4, %v628_v37, 0.0  ;;  %v387_v46 = vmul.f32 %v385_v45, %v381_v44 }
 0x293   : > { %376 = vadd.xlane.f32.xlu2 %v375_v38 }
 0x306   : > { %v377_v41 = vpop.xlane.xlu2 %376 }
 0x307   : > { %v378_v42 = vadd.f32 %v377_v41, %v374_v40 }
 0x309   : > { %380 = vst.msk [vmem:[#allocation4] sm:$0xff] %vm264_vm2, %v378_v42 }
 0x310   : > { %v420_v43 = vld [vmem:[#allocation4] sm:$0xff] }
 0x311   : > { %629 = vrcp.f32 %v420_v43 }
 0x315   : > { %v411_v47 = vpop.f32.mrf.mxu3 }
 0x316   : > { %v414_v48 = vadd.f32 %v411_v47, %v387_v46 }
 0x317   : > { %v630_v49 = vpop.eup %629 }
 0x318   : > { %415 = vst.msk [vmem:[#allocation5] sm:$0xff] %vm262_vm1, %v414_v48  ;;  %425 = vperm.xlu0 %624, %v630_v49  }
 0x31f   : > { %v422_v50 = vld [vmem:[#allocation5] sm:$0xff] }
 0x38a   : > { %v426_v51 = vpop.permute.xlu0 %425 }
 0x38b   : > { %v428_v52 = vmul.f32 %v426_v51, %v422_v50 }
 0x38d   : > { %430 = vst.msk [vmem:[%s211_s5] sm:$0xff] %vm262_vm1, %v428_v52 }
 0x38e   : > { %658 = shalt.err (!%p655_p5)
}
 0x38f   : > { %554 = dma.vmem_to_hbm [thread:$0]  (%p775_p4), %s446_s6, 128, %s448_s7, %s432_s8  }
 0x390 PF: > { %p560_p6 = scmp.ge.s32.totalorder %s709_s17, 2  ;;  %s459_s23 = sand.u32 1, %s689_s12  }
 0x391   : > { %s460_s26 = scalar_lea.sflag [#allocation7], %s459_s23 }
 0x392   : > { %p557_p7 = pnand %p560_p6, %p782_p8 }
 0x394   : > { %p558_p9 = pneg %p557_p7 }
 0x396   : > { %684 = dma.done.wait (%p558_p9), %s460_s26, 128  }
 0x397   : > { %686 = vsyncadd (%p558_p9), %s460_s26, 4294967168  ;;  %s16_s17 = sadd.s32 1, %s709_s17   ;;  %s869_s12 = smov %s693_s13 }
 0x398   : > { %p13_p10 = scmp.ge.s32.totalorder %s16_s17, 4   ;;  %s870_s13 = smov %s697_s14 }
 0x399   : > { %s871_s14 = smov %s788_s25  ;;  %s872_s15 = smov %s705_s16 }
 0x39a   : > { %s873_s16 = smov %s875_s20  ;;  %15 = sbr.rel (!%p13_p10) target bundleno = 4 (0x4), region = 82 }
 0x39f   :  { %466 = vsyncpa [#allocation7], 1 }
 0x3a0   :  { %468 = vsyncpa [#allocation7 + $0x1], 1 }

</bundles_post_ra>
